<compile_context>
chip_gen: v7x
topology: tpu7x:2x2x1
jax: 0.10.0
libtpu: 0.0.40
codegen_flags: <defaults>
</compile_context>

<pallas_src>
import jax
import jax.numpy as jnp
from jax.experimental import pallas as pl
from jax.experimental.pallas import tpu as pltpu

_LANES = 128


def _cord_loss_kernel(xp_ref, xl_ref, yp_ref, yl_ref, vis_ref,
                      sse_ref, cnt_ref):
    step = pl.program_id(1)

    @pl.when(step == 0)
    def _():
        sse_ref[...] = jnp.zeros_like(sse_ref)
        cnt_ref[...] = jnp.zeros_like(cnt_ref)

    m = vis_ref[...].astype(jnp.float32)          # int8 -> f32 on the VPU
    dx = xp_ref[...] - xl_ref[...]
    dy = yp_ref[...] - yl_ref[...]
    err = m * (dx * dx + dy * dy)                 # merged x+y squared error

    tm, n = err.shape
    g = tm // 8
    # VPU-only partial reduction: fold the tile into one (8, 128) vreg slab.
    sse_ref[...] += err.reshape(g, 8, n).sum(axis=0)
    cnt_ref[...] += m.reshape(g, 8, n).sum(axis=0)


def cord_loss(x_pred, x_label, y_pred, y_label, visiable, *,
              size_average=True, tm=1024, num_parallel=2):
    """Pallas equivalent of cordLoss.forward.

    visiable may be bool or numeric; nonzero entries are 'visible'.
    Note: if the mask is all-zero and size_average=True the result is NaN,
    matching PyTorch's MSELoss(mean) on an empty selection.
    """
    xp = jnp.asarray(x_pred, jnp.float32).reshape(-1)
    xl = jnp.asarray(x_label, jnp.float32).reshape(-1)
    yp = jnp.asarray(y_pred, jnp.float32).reshape(-1)
    yl = jnp.asarray(y_label, jnp.float32).reshape(-1)
    vis = jnp.asarray(visiable).astype(jnp.int8).reshape(-1)   # 1-byte stream

    total = xp.shape[0]
    rows = pl.cdiv(total, _LANES)

    # Row tile: multiple of 32 (int8 sublane tiling), clamped to the data size.
    tm = max(32, min(tm, pl.cdiv(rows, 32) * 32))
    # Parallel split (v7x megacore); shrink if there isn't enough work.
    p = max(1, min(num_parallel, pl.cdiv(rows, tm)))

    chunk_rows = tm * p
    padded_rows = pl.cdiv(rows, chunk_rows) * chunk_rows
    padded_total = padded_rows * _LANES
    pad = padded_total - total

    def _pad_reshape(a):
        if pad:
            a = jnp.pad(a, (0, pad))              # zero pad; zero mask => no-op
        return a.reshape(padded_rows, _LANES)

    xp, xl, yp, yl, vis = map(_pad_reshape, (xp, xl, yp, yl, vis))

    steps = padded_rows // (tm * p)
    grid = (p, steps)

    in_spec = pl.BlockSpec((tm, _LANES), lambda c, i: (c * steps + i, 0))
    out_spec = pl.BlockSpec((None, 8, _LANES), lambda c, i: (c, 0, 0))

    sse_part, cnt_part = pl.pallas_call(
        _cord_loss_kernel,
        out_shape=(jax.ShapeDtypeStruct((p, 8, _LANES), jnp.float32),
                   jax.ShapeDtypeStruct((p, 8, _LANES), jnp.float32)),
        grid_spec=pltpu.PrefetchScalarGridSpec(
            num_scalar_prefetch=0,
            grid=grid,
            in_specs=[in_spec, in_spec, in_spec, in_spec, in_spec],
            out_specs=(out_spec, out_spec),
        ),
        compiler_params=pltpu.CompilerParams(
            dimension_semantics=("parallel", "arbitrary")),
    )(xp, xl, yp, yl, vis)

    sse = jnp.sum(sse_part)    # tiny (p, 8, 128) reduce in XLA
    cnt = jnp.sum(cnt_part)

    if size_average:
        loss = sse / cnt       # == sumx/cnt + sumy/cnt
    else:
        loss = sse             # == sumx + sumy
    return loss * 10.0


def _reference(x_pred, x_label, y_pred, y_label, visiable, size_average=True):
    """Pure-JAX reference mimicking the PyTorch boolean-index + MSELoss."""
    m = jnp.asarray(visiable).astype(jnp.float32)
    dx2 = m * (jnp.asarray(x_pred, jnp.float32) - jnp.asarray(x_label, jnp.float32)) ** 2
    dy2 = m * (jnp.asarray(y_pred, jnp.float32) - jnp.asarray(y_label, jnp.float32)) ** 2
    cnt = jnp.sum(m)
    if size_average:
        l1 = jnp.sum(dx2) / cnt
        l2 = jnp.sum(dy2) / cnt
    else:
        l1 = jnp.sum(dx2)
        l2 = jnp.sum(dy2)
    return (l1 + l2) * 10.0


if __name__ == "__main__":
    key = jax.random.PRNGKey(0)

    # batch=2, 16 keypoints (typical cordLoss input), plus an odd shape that
    # exercises the padding / non-divisible path.
    for shape in [(2, 16), (4, 7, 9)]:
        k1, k2, k3, k4, k5 = jax.random.split(jax.random.fold_in(key, shape[-1]), 5)
        x_pred = jax.random.normal(k1, shape, dtype=jnp.float32)
        x_label = jax.random.normal(k2, shape, dtype=jnp.float32)
        y_pred = jax.random.normal(k3, shape, dtype=jnp.float32)
        y_label = jax.random.normal(k4, shape, dtype=jnp.float32)
        visiable = jax.random.bernoulli(k5, p=0.7, shape=shape)   # boolean mask

        for size_average in (True, False):
            out = cord_loss(x_pred, x_label, y_pred, y_label, visiable,
                            size_average=size_average)
            out = jax.block_until_ready(out)
            ref = _reference(x_pred, x_label, y_pred, y_label, visiable,
                             size_average=size_average)
            assert jnp.allclose(out, ref, rtol=1e-5, atol=1e-5), (shape, size_average, out, ref)

    print("KERNEL_OK")
</pallas_src>

<mosaic_0001>
module attributes {stable_mosaic.version = 11 : i64} {
  func.func @_cord_loss_kernel(%arg0: i32, %arg1: i32, %arg2: memref<32x128xf32, #tpu.memory_space<vmem>>, %arg3: memref<32x128xf32, #tpu.memory_space<vmem>>, %arg4: memref<32x128xf32, #tpu.memory_space<vmem>>, %arg5: memref<32x128xf32, #tpu.memory_space<vmem>>, %arg6: memref<32x128xi8, #tpu.memory_space<vmem>>, %arg7: memref<1x8x128xf32, #tpu.memory_space<vmem>>, %arg8: memref<1x8x128xf32, #tpu.memory_space<vmem>>) attributes {dimension_semantics = [#tpu.dimension_semantics<parallel>, #tpu.dimension_semantics<arbitrary>], iteration_bounds = array<i64: 1, 1>, scalar_prefetch = 0 : i64, scratch_operands = 0 : i64, tpu.core_type = #tpu.core_type<tc>, window_params = [{transform_indices = @transform_0, window_bounds = array<i64: 32, 128>}, {transform_indices = @transform_1, window_bounds = array<i64: 32, 128>}, {transform_indices = @transform_2, window_bounds = array<i64: 32, 128>}, {transform_indices = @transform_3, window_bounds = array<i64: 32, 128>}, {transform_indices = @transform_4, window_bounds = array<i64: 32, 128>}, {transform_indices = @transform_5, window_bounds = array<i64: 1, 8, 128>}, {transform_indices = @transform_6, window_bounds = array<i64: 1, 8, 128>}]} {
    %c0_i32 = arith.constant 0 : i32
    %0 = arith.cmpi eq, %arg1, %c0_i32 : i32
    %1 = arith.extui %0 : i1 to i32
    %c0_i32_0 = arith.constant 0 : i32
    %2 = arith.cmpi ne, %1, %c0_i32_0 : i32
    scf.if %2 {
      %cst_23 = arith.constant 0.000000e+00 : f32
      %31 = vector.broadcast %cst_23 : f32 to vector<8x128xf32>
      %c0_24 = arith.constant 0 : index
      %c0_25 = arith.constant 0 : index
      %c0_26 = arith.constant 0 : index
      %32 = vector.load %arg7[%c0_24, %c0_25, %c0_26] : memref<1x8x128xf32, #tpu.memory_space<vmem>>, vector<1x8x128xf32>
      %33 = vector.shape_cast %32 : vector<1x8x128xf32> to vector<8x128xf32>
      %34 = vector.shape_cast %31 : vector<8x128xf32> to vector<1x8x128xf32>
      tpu.vector_store %arg7[%c0_24, %c0_25, %c0_26], %34 {strides = array<i32>} : memref<1x8x128xf32, #tpu.memory_space<vmem>>, vector<1x8x128xf32>,
      %cst_27 = arith.constant 0.000000e+00 : f32
      %35 = vector.broadcast %cst_27 : f32 to vector<8x128xf32>
      %c0_28 = arith.constant 0 : index
      %c0_29 = arith.constant 0 : index
      %c0_30 = arith.constant 0 : index
      %36 = vector.load %arg8[%c0_28, %c0_29, %c0_30] : memref<1x8x128xf32, #tpu.memory_space<vmem>>, vector<1x8x128xf32>
      %37 = vector.shape_cast %36 : vector<1x8x128xf32> to vector<8x128xf32>
      %38 = vector.shape_cast %35 : vector<8x128xf32> to vector<1x8x128xf32>
      tpu.vector_store %arg8[%c0_28, %c0_29, %c0_30], %38 {strides = array<i32>} : memref<1x8x128xf32, #tpu.memory_space<vmem>>, vector<1x8x128xf32>,
    } else {
    }
    %c0 = arith.constant 0 : index
    %c0_1 = arith.constant 0 : index
    %3 = vector.load %arg6[%c0, %c0_1] : memref<32x128xi8, #tpu.memory_space<vmem>>, vector<32x128xi8>
    %4 = arith.sitofp %3 : vector<32x128xi8> to vector<32x128xf32>
    %c0_2 = arith.constant 0 : index
    %c0_3 = arith.constant 0 : index
    %5 = vector.load %arg2[%c0_2, %c0_3] : memref<32x128xf32, #tpu.memory_space<vmem>>, vector<32x128xf32>
    %c0_4 = arith.constant 0 : index
    %c0_5 = arith.constant 0 : index
    %6 = vector.load %arg3[%c0_4, %c0_5] : memref<32x128xf32, #tpu.memory_space<vmem>>, vector<32x128xf32>
    %7 = arith.subf %5, %6 : vector<32x128xf32>
    %c0_6 = arith.constant 0 : index
    %c0_7 = arith.constant 0 : index
    %8 = vector.load %arg4[%c0_6, %c0_7] : memref<32x128xf32, #tpu.memory_space<vmem>>, vector<32x128xf32>
    %c0_8 = arith.constant 0 : index
    %c0_9 = arith.constant 0 : index
    %9 = vector.load %arg5[%c0_8, %c0_9] : memref<32x128xf32, #tpu.memory_space<vmem>>, vector<32x128xf32>
    %10 = arith.subf %8, %9 : vector<32x128xf32>
    %11 = arith.mulf %7, %7 : vector<32x128xf32>
    %12 = arith.mulf %10, %10 : vector<32x128xf32>
    %13 = arith.addf %11, %12 : vector<32x128xf32>
    %14 = arith.mulf %4, %13 : vector<32x128xf32>
    %c0_10 = arith.constant 0 : index
    %c0_11 = arith.constant 0 : index
    %c0_12 = arith.constant 0 : index
    %15 = vector.load %arg7[%c0_10, %c0_11, %c0_12] : memref<1x8x128xf32, #tpu.memory_space<vmem>>, vector<1x8x128xf32>
    %16 = vector.shape_cast %15 : vector<1x8x128xf32> to vector<8x128xf32>
    %17 = vector.shape_cast %14 : vector<32x128xf32> to vector<4x8x128xf32>
    %cst = arith.constant dense<0.000000e+00> : vector<8x128xf32>
    %18 = vector.multi_reduction <add>, %17, %cst [0] : vector<4x8x128xf32> to vector<8x128xf32>
    %19 = arith.addf %16, %18 : vector<8x128xf32>
    %c0_13 = arith.constant 0 : index
    %c0_14 = arith.constant 0 : index
    %c0_15 = arith.constant 0 : index
    %20 = vector.load %arg7[%c0_13, %c0_14, %c0_15] : memref<1x8x128xf32, #tpu.memory_space<vmem>>, vector<1x8x128xf32>
    %21 = vector.shape_cast %20 : vector<1x8x128xf32> to vector<8x128xf32>
    %22 = vector.shape_cast %19 : vector<8x128xf32> to vector<1x8x128xf32>
    tpu.vector_store %arg7[%c0_13, %c0_14, %c0_15], %22 {strides = array<i32>} : memref<1x8x128xf32, #tpu.memory_space<vmem>>, vector<1x8x128xf32>,
    %c0_16 = arith.constant 0 : index
    %c0_17 = arith.constant 0 : index
    %c0_18 = arith.constant 0 : index
    %23 = vector.load %arg8[%c0_16, %c0_17, %c0_18] : memref<1x8x128xf32, #tpu.memory_space<vmem>>, vector<1x8x128xf32>
    %24 = vector.shape_cast %23 : vector<1x8x128xf32> to vector<8x128xf32>
    %25 = vector.shape_cast %4 : vector<32x128xf32> to vector<4x8x128xf32>
    %cst_19 = arith.constant dense<0.000000e+00> : vector<8x128xf32>
    %26 = vector.multi_reduction <add>, %25, %cst_19 [0] : vector<4x8x128xf32> to vector<8x128xf32>
    %27 = arith.addf %24, %26 : vector<8x128xf32>
    %c0_20 = arith.constant 0 : index
    %c0_21 = arith.constant 0 : index
    %c0_22 = arith.constant 0 : index
    %28 = vector.load %arg8[%c0_20, %c0_21, %c0_22] : memref<1x8x128xf32, #tpu.memory_space<vmem>>, vector<1x8x128xf32>
    %29 = vector.shape_cast %28 : vector<1x8x128xf32> to vector<8x128xf32>
    %30 = vector.shape_cast %27 : vector<8x128xf32> to vector<1x8x128xf32>
    tpu.vector_store %arg8[%c0_20, %c0_21, %c0_22], %30 {strides = array<i32>} : memref<1x8x128xf32, #tpu.memory_space<vmem>>, vector<1x8x128xf32>,
    return
  }
  func.func @transform_0(%arg0: i32, %arg1: i32) -> (i32, i32) {
    %c1_i32 = arith.constant 1 : i32
    %0 = arith.muli %arg0, %c1_i32 : i32
    %1 = arith.addi %0, %arg1 : i32
    %c0_i32 = arith.constant 0 : i32
    %c0_i32_0 = arith.constant 0 : i32
    return %1, %c0_i32 : i32, i32
  }
  func.func @transform_1(%arg0: i32, %arg1: i32) -> (i32, i32) {
    %c1_i32 = arith.constant 1 : i32
    %0 = arith.muli %arg0, %c1_i32 : i32
    %1 = arith.addi %0, %arg1 : i32
    %c0_i32 = arith.constant 0 : i32
    %c0_i32_0 = arith.constant 0 : i32
    return %1, %c0_i32 : i32, i32
  }
  func.func @transform_2(%arg0: i32, %arg1: i32) -> (i32, i32) {
    %c1_i32 = arith.constant 1 : i32
    %0 = arith.muli %arg0, %c1_i32 : i32
    %1 = arith.addi %0, %arg1 : i32
    %c0_i32 = arith.constant 0 : i32
    %c0_i32_0 = arith.constant 0 : i32
    return %1, %c0_i32 : i32, i32
  }
  func.func @transform_3(%arg0: i32, %arg1: i32) -> (i32, i32) {
    %c1_i32 = arith.constant 1 : i32
    %0 = arith.muli %arg0, %c1_i32 : i32
    %1 = arith.addi %0, %arg1 : i32
    %c0_i32 = arith.constant 0 : i32
    %c0_i32_0 = arith.constant 0 : i32
    return %1, %c0_i32 : i32, i32
  }
  func.func @transform_4(%arg0: i32, %arg1: i32) -> (i32, i32) {
    %c1_i32 = arith.constant 1 : i32
    %0 = arith.muli %arg0, %c1_i32 : i32
    %1 = arith.addi %0, %arg1 : i32
    %c0_i32 = arith.constant 0 : i32
    %c0_i32_0 = arith.constant 0 : i32
    return %1, %c0_i32 : i32, i32
  }
  func.func @transform_5(%arg0: i32, %arg1: i32) -> (i32, i32, i32) {
    %c0_i32 = arith.constant 0 : i32
    %c0_i32_0 = arith.constant 0 : i32
    %c0_i32_1 = arith.constant 0 : i32
    return %arg0, %c0_i32, %c0_i32_0 : i32, i32, i32
  }
  func.func @transform_6(%arg0: i32, %arg1: i32) -> (i32, i32, i32) {
    %c0_i32 = arith.constant 0 : i32
    %c0_i32_0 = arith.constant 0 : i32
    %c0_i32_1 = arith.constant 0 : i32
    return %arg0, %c0_i32, %c0_i32_0 : i32, i32, i32
  }
}

</mosaic_0001>

<bundles_post_ra>
// kernel: tpu_custom_call.1
= control target key start
LH: loop header
LB: loop body
LE: loop exit
PB: predicated region body
PF: predicated region fallthrough
CT: control target
= control target key end

     0   :  { %12 = vsyncpa [#allocation3], 0  ;;  %s519_s0 = inlined_call_operand.hbm [shape: f32[32,128], index: 0, kind: input, shape index: {}]   ;;  %s520_s1 = inlined_call_operand.hbm [shape: f32[32,128], index: 1, kind: input, shape index: {}]   ;;  %s521_s2 = inlined_call_operand.hbm [shape: f32[32,128], index: 2, kind: input, shape index: {}]   ;;  %s522_s3 = inlined_call_operand.hbm [shape: f32[32,128], index: 3, kind: input, shape index: {}]   ;;  %s523_s4 = inlined_call_operand.vmem [shape: s8[32,128], index: 4, kind: input, shape index: {}]   ;;  %s524_s5 = inlined_call_operand.hbm [shape: f32[1,8,128], index: 5, kind: output, shape index: {0}]   ;;  %s525_s6 = inlined_call_operand.hbm [shape: f32[1,8,128], index: 6, kind: output, shape index: {1}]  }
   0x1   :  { %13 = vsyncpa [#allocation6], 0 }
   0x2   :  { %14 = vsyncpa [#allocation9], 0 }
   0x3   :  { %15 = vsyncpa [#allocation4], 0 }
   0x4   :  { %16 = vsyncpa [#allocation12], 0  ;;  %s375_s21 = smov [#allocation5]   ;;  %s376_s23 = smov [#allocation2]  }
   0x5   :  { %s42_s22 = sshll.u32 %s375_s21, 4  ;;  %s26_s24 = sshll.u32 %s376_s23, 4  ;;  %s43_s22 = int_to_ptr.vmem [resolvable:$true] %s42_s22  ;;  %s418_s24 = int_to_ptr.vmem [resolvable:$true] %s26_s24 }
   0x6   :  { %s233_s27 = scalar_lea.hbm %s520_s1, 512 }
   0x7   :  { %p234_p0 = scmp.ne.s32.totalorder %s520_s1, %s233_s27  ;;  %p237_p1 = scmp.lt.u32.totalorder %s233_s27, %s520_s1 }
   0x9   :  { %p239_p2 = pnand %p237_p1, %p234_p0 }
   0xb   :  { %242 = shalt.err (!%p239_p2)
}
   0xc   :  { %s243_s8 = scalar_lea.vmem %s43_s22, 512  ;;  %p248_p4 = scmp.lt.s32.totalorder %s43_s22, %s43_s22 }
   0xd   :  { %p244_p3 = scmp.ne.s32.totalorder %s43_s22, %s243_s8  ;;  %p249_p5 = scmp.lt.s32.totalorder %s243_s8, %s243_s8 }
   0xf   :  { %p250_p6 = por %p249_p5, %p248_p4 }
  0x11   :  { %p251_p7 = pnand %p250_p6, %p244_p3 }
  0x13   :  { %254 = shalt.err (!%p251_p7)
}
  0x14   :  { %s377_s9 = smov 128   ;;  %s378_s10 = smov 8  }
  0x15   :  { %48 = dma.hbm_to_vmem [thread:$0]  %s520_s1, 512, %s43_s22, [#allocation6], %s377_s9, %s377_s9, %s378_s10  }
  0x16   :  { %s255_s15 = scalar_lea.hbm %s519_s0, 512 }
  0x17   :  { %p256_p8 = scmp.ne.s32.totalorder %s519_s0, %s255_s15  ;;  %p259_p9 = scmp.lt.u32.totalorder %s255_s15, %s519_s0 }
  0x19   :  { %p261_p10 = pnand %p259_p9, %p256_p8 }
  0x1b   :  { %264 = shalt.err (!%p261_p10)
}
  0x1c   :  { %s265_s20 = scalar_lea.vmem %s418_s24, 512  ;;  %p270_p12 = scmp.lt.s32.totalorder %s418_s24, %s418_s24 }
  0x1d   :  { %p266_p11 = scmp.ne.s32.totalorder %s418_s24, %s265_s20  ;;  %p271_p13 = scmp.lt.s32.totalorder %s265_s20, %s265_s20 }
  0x1f   :  { %p272_p0 = por %p271_p13, %p270_p12 }
  0x21   :  { %p273_p1 = pnand %p272_p0, %p266_p11 }
  0x23   :  { %276 = shalt.err (!%p273_p1)
}
  0x24   :  { %32 = dma.hbm_to_vmem [thread:$0]  %s519_s0, 512, %s418_s24, [#allocation3], %s377_s9, %s377_s9, %s378_s10  }
  0x25   :  { %s379_s22 = smov [#allocation7]   ;;  %s380_s25 = smov [#allocation8]  }
  0x26   :  { %s58_s23 = sshll.u32 %s379_s22, 4  ;;  %s74_s26 = sshll.u32 %s380_s25, 4  ;;  %s59_s23 = int_to_ptr.vmem [resolvable:$true] %s58_s23  ;;  %s455_s26 = int_to_ptr.vmem [resolvable:$true] %s74_s26 }
  0x27   :  { %s277_s29 = scalar_lea.hbm %s521_s2, 512 }
  0x28   :  { %p278_p2 = scmp.ne.s32.totalorder %s521_s2, %s277_s29  ;;  %p281_p3 = scmp.lt.u32.totalorder %s277_s29, %s521_s2 }
  0x2a   :  { %p283_p4 = pnand %p281_p3, %p278_p2 }
  0x2c   :  { %286 = shalt.err (!%p283_p4)
}
  0x2d   :  { %s287_s0 = scalar_lea.vmem %s59_s23, 512  ;;  %p292_p6 = scmp.lt.s32.totalorder %s59_s23, %s59_s23 }
  0x2e   :  { %p288_p5 = scmp.ne.s32.totalorder %s59_s23, %s287_s0  ;;  %p293_p7 = scmp.lt.s32.totalorder %s287_s0, %s287_s0 }
  0x30   :  { %p294_p8 = por %p293_p7, %p292_p6 }
  0x32   :  { %p295_p9 = pnand %p294_p8, %p288_p5 }
  0x34   :  { %298 = shalt.err (!%p295_p9)
}
  0x35   :  { %64 = dma.hbm_to_vmem [thread:$0]  %s521_s2, 512, %s59_s23, [#allocation6], %s377_s9, %s377_s9, %s378_s10  }
  0x36   :  { %s299_s15 = scalar_lea.hbm %s522_s3, 512 }
  0x37   :  { %p300_p10 = scmp.ne.s32.totalorder %s522_s3, %s299_s15  ;;  %p303_p11 = scmp.lt.u32.totalorder %s299_s15, %s522_s3 }
  0x39   :  { %p305_p12 = pnand %p303_p11, %p300_p10 }
  0x3b   :  { %308 = shalt.err (!%p305_p12)
}
  0x3c   :  { %s309_s20 = scalar_lea.vmem %s455_s26, 512  ;;  %p314_p0 = scmp.lt.s32.totalorder %s455_s26, %s455_s26 }
  0x3d   :  { %p310_p13 = scmp.ne.s32.totalorder %s455_s26, %s309_s20  ;;  %p315_p1 = scmp.lt.s32.totalorder %s309_s20, %s309_s20 }
  0x3f   :  { %p316_p2 = por %p315_p1, %p314_p0 }
  0x41   :  { %p317_p3 = pnand %p316_p2, %p310_p13 }
  0x43   :  { %320 = shalt.err (!%p317_p3)
}
  0x44   :  { %80 = dma.hbm_to_vmem [thread:$0]  %s522_s3, 512, %s455_s26, [#allocation9], %s377_s9, %s377_s9, %s378_s10  }
  0x45   :  { %365 = dma.done.wait [#allocation3], 512  }
  0x46   :  { %366 = vsyncadd [#allocation3], 4294966784 }
  0x47   :  { %367 = dma.done.wait [#allocation6], 1024  }
  0x48   :  { %368 = vsyncadd [#allocation6], 4294966272 }
  0x49   :  { %369 = dma.done.wait [#allocation9], 512  }
  0x4a   :  { %370 = vsyncadd [#allocation9], 4294966784  ;;  %v126_v0 = vld [vmem:[%s523_s4] sm:$0xff]  ;;  %v136_v2 = vld [vmem:[#allocation2 + $0x8] sm:$0xff]  ;;  %s381_s3 = smov [#allocation11]  }
  0x4b   :  { %v135_v1 = vld [vmem:[#allocation2] sm:$0xff]  ;;  %v127_v3 = vunpack.c.0.s8 %v126_v0  ;;  %v128_v4 = vunpack.c.1.s8 %v126_v0  ;;  %v129_v5 = vunpack.c.2.s8 %v126_v0  ;;  %v130_v6 = vunpack.c.3.s8 %v126_v0  ;;  %v137_v7 = vld [vmem:[#allocation2 + $0x10] sm:$0xff]  ;;  %v138_v8 = vld [vmem:[#allocation2 + $0x18] sm:$0xff]  ;;  %s203_s4 = sshll.u32 %s381_s3, 4  ;;  %s204_s4 = int_to_ptr.vmem [resolvable:$true] %s203_s4 }
  0x4c   :  { %v139_v9 = vld [vmem:[#allocation5] sm:$0xff]  ;;  %v140_v10 = vld [vmem:[#allocation5 + $0x8] sm:$0xff]  ;;  %v141_v11 = vld [vmem:[#allocation5 + $0x10] sm:$0xff]  ;;  %s321_s9 = scalar_lea.vmem %s204_s4, 128  ;;  %p326_p5 = scmp.lt.s32.totalorder %s204_s4, %s204_s4 }
  0x4d   :  { %v142_v12 = vld [vmem:[#allocation5 + $0x18] sm:$0xff]  ;;  %v143_v13 = vsub.f32 %v135_v1, %v139_v9  ;;  %v131_v14 = vcvt.s32.f32 %v127_v3  ;;  %v132_v15 = vcvt.s32.f32 %v128_v4  ;;  %v133_v16 = vcvt.s32.f32 %v129_v5  ;;  %v147_v17 = vld [vmem:[#allocation7] sm:$0xff]  ;;  %v148_v18 = vld [vmem:[#allocation7 + $0x8] sm:$0xff]  ;;  %p322_p4 = scmp.ne.s32.totalorder %s204_s4, %s321_s9  ;;  %p327_p6 = scmp.lt.s32.totalorder %s321_s9, %s321_s9 }
  0x4e   :  { %v149_v19 = vld [vmem:[#allocation7 + $0x10] sm:$0xff]  ;;  %v134_v20 = vcvt.s32.f32 %v130_v6  ;;  %v144_v21 = vsub.f32 %v136_v2, %v140_v10  ;;  %v145_v22 = vsub.f32 %v137_v7, %v141_v11  ;;  %v146_v23 = vsub.f32 %v138_v8, %v142_v12  ;;  %v150_v24 = vld [vmem:[#allocation7 + $0x18] sm:$0xff]  ;;  %v151_v25 = vld [vmem:[#allocation8] sm:$0xff] }
  0x4f   :  { %v152_v26 = vld [vmem:[#allocation8 + $0x8] sm:$0xff]  ;;  %v153_v27 = vld [vmem:[#allocation8 + $0x10] sm:$0xff]  ;;  %v154_v28 = vld [vmem:[#allocation8 + $0x18] sm:$0xff]  ;;  %v155_v29 = vsub.f32 %v147_v17, %v151_v25  ;;  %v159_v31 = vmul.f32 %v143_v13, %v143_v13  ;;  %v182_v32 = vadd.f32 %v132_v15, %v131_v14  ;;  %p328_p7 = por %p327_p6, %p326_p5 }
  0x50   :  { %v156_v30 = vsub.f32 %v148_v18, %v152_v26  ;;  %v157_v33 = vsub.f32 %v149_v19, %v153_v27  ;;  %v158_v34 = vsub.f32 %v150_v24, %v154_v28  ;;  %v160_v35 = vmul.f32 %v144_v21, %v144_v21 }
  0x51   :  { %v161_v36 = vmul.f32 %v145_v22, %v145_v22  ;;  %v162_v37 = vmul.f32 %v146_v23, %v146_v23  ;;  %v163_v38 = vmul.f32 %v155_v29, %v155_v29  ;;  %v183_v40 = vadd.f32 %v182_v32, %v133_v16  ;;  %p329_p8 = pnand %p328_p7, %p322_p4 }
  0x52   :  { %v164_v39 = vmul.f32 %v156_v30, %v156_v30  ;;  %v165_v41 = vmul.f32 %v157_v33, %v157_v33  ;;  %v166_v42 = vmul.f32 %v158_v34, %v158_v34 }
  0x53   :  { %v167_v43 = vadd.f32 %v163_v38, %v159_v31  ;;  %v184_v45 = vadd.f32 %v183_v40, %v134_v20 }
  0x54   :  { %v168_v44 = vadd.f32 %v164_v39, %v160_v35  ;;  %v169_v46 = vadd.f32 %v165_v41, %v161_v36  ;;  %v170_v47 = vadd.f32 %v166_v42, %v162_v37 }
  0x55   :  { %v171_v48 = vmul.f32 %v167_v43, %v131_v14  ;;  %186 = vst [vmem:[#allocation11] sm:$0xff] %v184_v45 }
  0x56   :  { %v172_v49 = vmul.f32 %v168_v44, %v132_v15  ;;  %v173_v50 = vmul.f32 %v169_v46, %v133_v16  ;;  %v174_v51 = vmul.f32 %v170_v47, %v134_v20 }
  0x58   :  { %v176_v52 = vadd.f32 %v172_v49, %v171_v48 }
  0x59   :  { %332 = shalt.err (!%p329_p8)
}
  0x5a   :  { %s333_s25 = scalar_lea.hbm %s525_s6, 128 }
  0x5b   :  { %p334_p9 = scmp.ne.s32.totalorder %s525_s6, %s333_s25  ;;  %p337_p10 = scmp.lt.u32.totalorder %s333_s25, %s525_s6 }
  0x5d   :  { %p339_p11 = pnand %p337_p10, %p334_p9 }
  0x5f   :  { %342 = shalt.err (!%p339_p11)
}
  0x60   :  { %206 = dma.vmem_to_hbm [thread:$0]  %s204_s4, 128, %s525_s6, [#allocation12]   ;;  %v177_v53 = vadd.f32 %v176_v52, %v173_v50 }
  0x61   :  { %s382_s8 = smov [#allocation10]  }
  0x62   :  { %s193_s11 = sshll.u32 %s382_s8, 4  ;;  %v178_v54 = vadd.f32 %v177_v53, %v174_v51  ;;  %s194_s11 = int_to_ptr.vmem [resolvable:$true] %s193_s11 }
  0x63   :  { %s343_s0 = scalar_lea.vmem %s194_s11, 128  ;;  %p348_p13 = scmp.lt.s32.totalorder %s194_s11, %s194_s11 }
  0x64   :  { %180 = vst [vmem:[#allocation10] sm:$0xff] %v178_v54  ;;  %p344_p12 = scmp.ne.s32.totalorder %s194_s11, %s343_s0  ;;  %p349_p0 = scmp.lt.s32.totalorder %s343_s0, %s343_s0 }
  0x66   :  { %p350_p1 = por %p349_p0, %p348_p13 }
  0x68   :  { %p351_p2 = pnand %p350_p1, %p344_p12 }
  0x6a   :  { %354 = shalt.err (!%p351_p2)
}
  0x6b   :  { %s355_s13 = scalar_lea.hbm %s524_s5, 128 }
  0x6c   :  { %p356_p3 = scmp.ne.s32.totalorder %s524_s5, %s355_s13  ;;  %p359_p4 = scmp.lt.u32.totalorder %s355_s13, %s524_s5 }
  0x6e   :  { %p361_p5 = pnand %p359_p4, %p356_p3 }
  0x70   :  { %364 = shalt.err (!%p361_p5)
}
  0x71   :  { %196 = dma.vmem_to_hbm [thread:$0]  %s194_s11, 128, %s524_s5, [#allocation4]  }
  0x72   :  { %371 = dma.done.wait [#allocation4], 128  }
  0x73   :  { %372 = vsyncadd [#allocation4], 4294967168 }
  0x74   :  { %373 = dma.done.wait [#allocation12], 128  }
  0x75   :  { %374 = vsyncadd [#allocation12], 4294967168 }
  0x76   :  { %213 = vsyncpa [#allocation3], 1 }
  0x77   :  { %214 = vsyncpa [#allocation6], 1 }
  0x78   :  { %215 = vsyncpa [#allocation9], 1 }
  0x79   :  { %216 = vsyncpa [#allocation4], 1 }
  0x7a   :  { %217 = vsyncpa [#allocation12], 1 }

</bundles_post_ra>
